<compile_context>
chip_gen: v6e
topology: v6e:2x2x1
jax: 0.10.0
libtpu: 0.0.40
codegen_flags: <defaults>
</compile_context>

<pallas_src>
import functools

import jax
import jax.numpy as jnp
from jax.experimental import pallas as pl
from jax.experimental.pallas import tpu as pltpu

LANES = 128
_ACC_ROWS = 8                       # accumulators are kept vreg-shaped: (8, 128)
_VMEM_LIMIT = 40 * 1024 * 1024      # > v5e's 16 MiB default scoped limit, < v7x's 64 MiB physical


def _smooth_l1(x, y):
    # Branchless SmoothL1 (beta = 1):
    #   |d| <  1 : t = |d| -> t*(|d| - 0.5*t) = 0.5*d^2
    #   |d| >= 1 : t = 1   -> |d| - 0.5
    d = x - y
    ad = jnp.abs(d)
    t = jnp.minimum(ad, 1.0)
    return t * (ad - 0.5 * t)


def _sl1_kernel(x_ref, y_ref, m_ref, sum_ref, cnt_ref, *,
                tile_rows, acc_rows, blocks_per_slice, first_edge_block,
                valid_rows, need_row_mask):
    c = pl.program_id(0)   # slice axis ("parallel": one slice per TensorCore on v7x)
    i = pl.program_id(1)   # streaming axis ("arbitrary": outputs stay resident -> accumulators)

    @pl.when(i == 0)
    def _():
        sum_ref[...] = jnp.zeros_like(sum_ref)
        cnt_ref[...] = jnp.zeros_like(cnt_ref)

    # Inputs arrive in their HBM dtype (f32 or bf16); exactly one in-register upcast here.
    x = x_ref[...].astype(jnp.float32)
    y = y_ref[...].astype(jnp.float32)
    l = _smooth_l1(x, y)
    valid = m_ref[...] != 0                      # uint8/int8 mask tile

    def fold(v):
        # (tile_rows, 128) -> (acc_rows, 128) with a layout-preserving reshape + VALU adds,
        # keeping cross-lane/sublane XLU reductions out of the steady state.
        if acc_rows == 1:                         # tiny single-block problems only
            return v.sum(axis=0, keepdims=True)
        return v.reshape(tile_rows // acc_rows, acc_rows, LANES).sum(axis=0)

    def accumulate(ok):
        # Garbage rows of ragged/duplicated edge blocks may carry NaN/Inf bit patterns:
        # exclude them via select, never multiply.
        sum_ref[...] += fold(jnp.where(ok, l, 0.0))[None]
        cnt_ref[...] += fold(ok.astype(jnp.float32))[None]

    if not need_row_mask:
        accumulate(valid)
    else:
        g_blk = c * blocks_per_slice + i         # logical block id (>= blocks_total for dups)

        @pl.when(g_blk < first_edge_block)       # interior blocks: mask-free fast path
        def _():
            accumulate(valid)

        @pl.when(g_blk >= first_edge_block)      # ragged last block / clamped duplicates only
        def _():
            row = jax.lax.broadcasted_iota(jnp.int32, (tile_rows, LANES), 0)
            in_range = (g_blk * tile_rows + row) < valid_rows
            accumulate(jnp.logical_and(valid, in_range))


def sl1_loss(inputs, targets, mask, *, tile_rows=8192, num_slices=2):
    """Mean SmoothL1 (beta=1) over elements where ``mask`` is nonzero (SL1Loss, ohem=False).

    mask:       pass uint8/int8 (0/1) for peak bandwidth.  A bool mask is accepted, but the
                pred->u8 convert cannot fuse into the Pallas custom call and costs one extra
                full pass over the mask.
    tile_rows:  rows of 128 lanes streamed per grid step.  8192 -> 4 MiB f32 blocks; x/y/mask
                double-buffered ~= 18 MiB VMEM (vmem_limit_bytes raised accordingly, safe on
                v5e/v6e/v7x).  Must be a multiple of 32 (8-bit mask sublane tiling).
    num_slices: leading "parallel" grid axis so the two v7x TensorCores each own a contiguous
                slice (negligible overhead on single-TC v5e/v6e).
    """
    assert inputs.shape == targets.shape == mask.shape
    assert tile_rows > 0 and tile_rows % 32 == 0

    x = inputs.reshape(-1)          # bitcast; keep HBM dtype (bf16 passthrough supported)
    y = targets.reshape(-1)
    m = mask.reshape(-1)
    if m.dtype == jnp.bool_:
        # Compatibility fallback only (extra mask pass); prefer uint8/int8 at the call site.
        m = m.astype(jnp.uint8)

    n = x.shape[0]
    rows = n // LANES               # full 128-lane rows handled by the kernel
    n_main = rows * LANES
    rem = n - n_main                # <128-element lane tail folded in by the wrapper

    def tail_terms():
        xt = x[n_main:].astype(jnp.float32)
        yt = y[n_main:].astype(jnp.float32)
        ok = m[n_main:] != 0
        lt = _smooth_l1(xt, yt)
        return jnp.sum(jnp.where(ok, lt, 0.0)), jnp.sum(ok.astype(jnp.float32))

    if rows == 0:
        # Whole problem is smaller than one 128-lane row: not worth a kernel launch.
        ts, tc = tail_terms()
        return (ts / tc).astype(jnp.float32)

    # (rows, 128) lane-dense views.  When n % 128 == 0 this is a pure bitcast (zero copies).
    # When n % 128 != 0 XLA may materialize the prefix slice.
    # TODO(synk): manual-DMA 1-D path to make the n % 128 != 0 case zero-copy as well.
    def view2d(a):
        a = a[:n_main] if rem else a
        return a.reshape(rows, LANES)

    x2, y2, m2 = view2d(x), view2d(y), view2d(m)

    tile = min(tile_rows, rows)                       # single full-array block for small inputs
    acc_rows = _ACC_ROWS if tile % _ACC_ROWS == 0 else 1

    blocks_total = pl.cdiv(rows, tile)
    n_slices = max(1, min(num_slices, blocks_total))
    bps = pl.cdiv(blocks_total, n_slices)             # blocks per slice
    ragged = (rows % tile) != 0
    first_edge_block = (blocks_total - 1) if ragged else blocks_total
    need_row_mask = ragged or (n_slices * bps != blocks_total)

    def in_idx(c, i):
        # Clamp so every generated DMA stays within the array; clamped duplicate blocks
        # (only possible on the last slice) are fully masked out in-kernel.
        return (jnp.minimum(c * bps + i, blocks_total - 1), 0)

    def out_idx(c, i):
        return (c, 0, 0)

    kernel = functools.partial(
        _sl1_kernel,
        tile_rows=tile,
        acc_rows=acc_rows,
        blocks_per_slice=bps,
        first_edge_block=first_edge_block,
        valid_rows=rows,
        need_row_mask=need_row_mask,
    )

    in_spec = pl.BlockSpec((tile, LANES), in_idx)
    out_spec = pl.BlockSpec((1, acc_rows, LANES), out_idx)

    part_sum, part_cnt = pl.pallas_call(
        kernel,
        out_shape=(
            jax.ShapeDtypeStruct((n_slices, acc_rows, LANES), jnp.float32),
            jax.ShapeDtypeStruct((n_slices, acc_rows, LANES), jnp.float32),
        ),
        grid_spec=pltpu.PrefetchScalarGridSpec(
            num_scalar_prefetch=0,
            grid=(n_slices, bps),
            in_specs=[in_spec, in_spec, in_spec],
            out_specs=[out_spec, out_spec],
        ),
        compiler_params=pltpu.CompilerParams(
            # TODO(synk): confirm in xprof that the leading axis lands one slice per v7x
            # TensorCore; if it doesn't, switch it to pltpu.CORE_PARALLEL.
            dimension_semantics=("parallel", "arbitrary"),
            vmem_limit_bytes=_VMEM_LIMIT,
        ),
    )(x2, y2, m2)

    total = jnp.sum(part_sum)
    count = jnp.sum(part_cnt)
    if rem:
        ts, tc = tail_terms()
        total = total + ts
        count = count + tc

    # Mean over masked elements (0/0 = NaN for an empty mask, matching torch.mean of an
    # empty selection).  Note: f32 running sums can drift slightly vs. a pairwise-reduced
    # reference for extremely large N (>=1e8-1e9 masked elements).
    return (total / count).astype(jnp.float32)


def _ref_sl1_loss(inputs, targets, mask):
    d = inputs.astype(jnp.float32) - targets.astype(jnp.float32)
    ad = jnp.abs(d)
    l = jnp.where(ad < 1.0, 0.5 * d * d, ad - 0.5)
    mf = (mask != 0).astype(jnp.float32)
    return jnp.sum(l * mf) / jnp.sum(mf)


if __name__ == "__main__":
    key = jax.random.PRNGKey(0)

    def make(shape, kk, mask_dtype=jnp.uint8):
        k1, k2, k3 = jax.random.split(kk, 3)
        inputs = jax.random.normal(k1, shape, dtype=jnp.float32) * 2.0
        targets = jax.random.normal(k2, shape, dtype=jnp.float32) * 2.0
        mask = jax.random.uniform(k3, shape) > 0.3
        if mask_dtype is not jnp.bool_:
            # compare + cast fuse at mask creation time: no extra pass in front of the kernel.
            mask = mask.astype(mask_dtype)
        return inputs, targets, mask

    k_a, k_b, k_c = jax.random.split(key, 3)

    # 1) small NCHW, n % 128 == 0, uint8 mask -> pure-bitcast single-block path, zero copies.
    args = make((2, 4, 16, 16), k_a)
    out = jax.block_until_ready(sl1_loss(*args))
    ref = _ref_sl1_loss(*args)
    assert jnp.allclose(out, ref, rtol=1e-5, atol=1e-5), (out, ref)

    # 2) n % 128 != 0 with a *bool* mask -> wrapper-side lane-tail fold + bool fallback path.
    args = make((2, 3, 7, 11), k_b, mask_dtype=jnp.bool_)
    out = jax.block_until_ready(sl1_loss(*args))
    ref = _ref_sl1_loss(*args)
    assert jnp.allclose(out, ref, rtol=1e-5, atol=1e-5), (out, ref)

    # 3) multi-block streaming: ragged last block, clamped duplicate block, 2 slices
    #    (exercises the edge-gated row mask and the per-slice partial sums).
    args = make((4, 8, 64, 100), k_c)
    out = jax.block_until_ready(sl1_loss(*args, tile_rows=128))
    ref = _ref_sl1_loss(*args)
    assert jnp.allclose(out, ref, rtol=1e-5, atol=1e-5), (out, ref)

    print("KERNEL_OK")
</pallas_src>

<mosaic_0001>
module attributes {stable_mosaic.version = 11 : i64} {
  func.func @_sl1_kernel(%arg0: i32, %arg1: i32, %arg2: memref<16x128xf32, #tpu.memory_space<vmem>>, %arg3: memref<16x128xf32, #tpu.memory_space<vmem>>, %arg4: memref<16x128xi8, #tpu.memory_space<vmem>>, %arg5: memref<1x8x128xf32, #tpu.memory_space<vmem>>, %arg6: memref<1x8x128xf32, #tpu.memory_space<vmem>>) attributes {dimension_semantics = [#tpu.dimension_semantics<parallel>, #tpu.dimension_semantics<arbitrary>], iteration_bounds = array<i64: 1, 1>, scalar_prefetch = 0 : i64, scratch_operands = 0 : i64, tpu.core_type = #tpu.core_type<tc>, window_params = [{transform_indices = @transform_0, window_bounds = array<i64: 16, 128>}, {transform_indices = @transform_1, window_bounds = array<i64: 16, 128>}, {transform_indices = @transform_2, window_bounds = array<i64: 16, 128>}, {transform_indices = @transform_3, window_bounds = array<i64: 1, 8, 128>}, {transform_indices = @transform_4, window_bounds = array<i64: 1, 8, 128>}]} {
    %c0_i32 = arith.constant 0 : i32
    %0 = arith.cmpi eq, %arg1, %c0_i32 : i32
    %1 = arith.extui %0 : i1 to i32
    %c0_i32_0 = arith.constant 0 : i32
    %2 = arith.cmpi ne, %1, %c0_i32_0 : i32
    scf.if %2 {
      %cst_22 = arith.constant 0.000000e+00 : f32
      %32 = vector.broadcast %cst_22 : f32 to vector<1x8x128xf32>
      %c0_23 = arith.constant 0 : index
      %c0_24 = arith.constant 0 : index
      %c0_25 = arith.constant 0 : index
      %33 = vector.load %arg5[%c0_23, %c0_24, %c0_25] : memref<1x8x128xf32, #tpu.memory_space<vmem>>, vector<1x8x128xf32>
      tpu.vector_store %arg5[%c0_23, %c0_24, %c0_25], %32 {strides = array<i32>} : memref<1x8x128xf32, #tpu.memory_space<vmem>>, vector<1x8x128xf32>,
      %cst_26 = arith.constant 0.000000e+00 : f32
      %34 = vector.broadcast %cst_26 : f32 to vector<1x8x128xf32>
      %c0_27 = arith.constant 0 : index
      %c0_28 = arith.constant 0 : index
      %c0_29 = arith.constant 0 : index
      %35 = vector.load %arg6[%c0_27, %c0_28, %c0_29] : memref<1x8x128xf32, #tpu.memory_space<vmem>>, vector<1x8x128xf32>
      tpu.vector_store %arg6[%c0_27, %c0_28, %c0_29], %34 {strides = array<i32>} : memref<1x8x128xf32, #tpu.memory_space<vmem>>, vector<1x8x128xf32>,
    } else {
    }
    %c0 = arith.constant 0 : index
    %c0_1 = arith.constant 0 : index
    %3 = vector.load %arg2[%c0, %c0_1] : memref<16x128xf32, #tpu.memory_space<vmem>>, vector<16x128xf32>
    %c0_2 = arith.constant 0 : index
    %c0_3 = arith.constant 0 : index
    %4 = vector.load %arg3[%c0_2, %c0_3] : memref<16x128xf32, #tpu.memory_space<vmem>>, vector<16x128xf32>
    %5 = arith.subf %3, %4 : vector<16x128xf32>
    %6 = math.absf %5 : vector<16x128xf32>
    %cst = arith.constant 1.000000e+00 : f32
    %7 = vector.broadcast %cst : f32 to vector<16x128xf32>
    %8 = arith.minimumf %6, %7 : vector<16x128xf32>
    %cst_4 = arith.constant 5.000000e-01 : f32
    %9 = vector.broadcast %cst_4 : f32 to vector<16x128xf32>
    %10 = arith.mulf %9, %8 : vector<16x128xf32>
    %11 = arith.subf %6, %10 : vector<16x128xf32>
    %12 = arith.mulf %8, %11 : vector<16x128xf32>
    %c0_5 = arith.constant 0 : index
    %c0_6 = arith.constant 0 : index
    %13 = vector.load %arg4[%c0_5, %c0_6] : memref<16x128xi8, #tpu.memory_space<vmem>>, vector<16x128xi8>
    %c0_i8 = arith.constant 0 : i8
    %14 = vector.broadcast %c0_i8 : i8 to vector<16x128xi8>
    %15 = arith.cmpi ne, %13, %14 : vector<16x128xi8>
    %c0_7 = arith.constant 0 : index
    %c0_8 = arith.constant 0 : index
    %c0_9 = arith.constant 0 : index
    %16 = vector.load %arg5[%c0_7, %c0_8, %c0_9] : memref<1x8x128xf32, #tpu.memory_space<vmem>>, vector<1x8x128xf32>
    %cst_10 = arith.constant 0.000000e+00 : f32
    %17 = vector.broadcast %cst_10 : f32 to vector<16x128xf32>
    %18 = arith.select %15, %12, %17 : vector<16x128xi1>, vector<16x128xf32>
    %19 = vector.shape_cast %18 : vector<16x128xf32> to vector<2x8x128xf32>
    %cst_11 = arith.constant dense<0.000000e+00> : vector<8x128xf32>
    %20 = vector.multi_reduction <add>, %19, %cst_11 [0] : vector<2x8x128xf32> to vector<8x128xf32>
    %21 = vector.shape_cast %20 : vector<8x128xf32> to vector<1x8x128xf32>
    %22 = arith.addf %16, %21 : vector<1x8x128xf32>
    %c0_12 = arith.constant 0 : index
    %c0_13 = arith.constant 0 : index
    %c0_14 = arith.constant 0 : index
    %23 = vector.load %arg5[%c0_12, %c0_13, %c0_14] : memref<1x8x128xf32, #tpu.memory_space<vmem>>, vector<1x8x128xf32>
    tpu.vector_store %arg5[%c0_12, %c0_13, %c0_14], %22 {strides = array<i32>} : memref<1x8x128xf32, #tpu.memory_space<vmem>>, vector<1x8x128xf32>,
    %c0_15 = arith.constant 0 : index
    %c0_16 = arith.constant 0 : index
    %c0_17 = arith.constant 0 : index
    %24 = vector.load %arg6[%c0_15, %c0_16, %c0_17] : memref<1x8x128xf32, #tpu.memory_space<vmem>>, vector<1x8x128xf32>
    %25 = arith.extui %15 : vector<16x128xi1> to vector<16x128xi32>
    %26 = arith.sitofp %25 : vector<16x128xi32> to vector<16x128xf32>
    %27 = vector.shape_cast %26 : vector<16x128xf32> to vector<2x8x128xf32>
    %cst_18 = arith.constant dense<0.000000e+00> : vector<8x128xf32>
    %28 = vector.multi_reduction <add>, %27, %cst_18 [0] : vector<2x8x128xf32> to vector<8x128xf32>
    %29 = vector.shape_cast %28 : vector<8x128xf32> to vector<1x8x128xf32>
    %30 = arith.addf %24, %29 : vector<1x8x128xf32>
    %c0_19 = arith.constant 0 : index
    %c0_20 = arith.constant 0 : index
    %c0_21 = arith.constant 0 : index
    %31 = vector.load %arg6[%c0_19, %c0_20, %c0_21] : memref<1x8x128xf32, #tpu.memory_space<vmem>>, vector<1x8x128xf32>
    tpu.vector_store %arg6[%c0_19, %c0_20, %c0_21], %30 {strides = array<i32>} : memref<1x8x128xf32, #tpu.memory_space<vmem>>, vector<1x8x128xf32>,
    return
  }
  func.func @transform_0(%arg0: i32, %arg1: i32) -> (i32, i32) {
    %c1_i32 = arith.constant 1 : i32
    %0 = arith.muli %arg0, %c1_i32 : i32
    %1 = arith.addi %0, %arg1 : i32
    %c0_i32 = arith.constant 0 : i32
    %2 = arith.minsi %1, %c0_i32 : i32
    %c0_i32_0 = arith.constant 0 : i32
    %c0_i32_1 = arith.constant 0 : i32
    return %2, %c0_i32_0 : i32, i32
  }
  func.func @transform_1(%arg0: i32, %arg1: i32) -> (i32, i32) {
    %c1_i32 = arith.constant 1 : i32
    %0 = arith.muli %arg0, %c1_i32 : i32
    %1 = arith.addi %0, %arg1 : i32
    %c0_i32 = arith.constant 0 : i32
    %2 = arith.minsi %1, %c0_i32 : i32
    %c0_i32_0 = arith.constant 0 : i32
    %c0_i32_1 = arith.constant 0 : i32
    return %2, %c0_i32_0 : i32, i32
  }
  func.func @transform_2(%arg0: i32, %arg1: i32) -> (i32, i32) {
    %c1_i32 = arith.constant 1 : i32
    %0 = arith.muli %arg0, %c1_i32 : i32
    %1 = arith.addi %0, %arg1 : i32
    %c0_i32 = arith.constant 0 : i32
    %2 = arith.minsi %1, %c0_i32 : i32
    %c0_i32_0 = arith.constant 0 : i32
    %c0_i32_1 = arith.constant 0 : i32
    return %2, %c0_i32_0 : i32, i32
  }
  func.func @transform_3(%arg0: i32, %arg1: i32) -> (i32, i32, i32) {
    %c0_i32 = arith.constant 0 : i32
    %c0_i32_0 = arith.constant 0 : i32
    %c0_i32_1 = arith.constant 0 : i32
    return %arg0, %c0_i32, %c0_i32_0 : i32, i32, i32
  }
  func.func @transform_4(%arg0: i32, %arg1: i32) -> (i32, i32, i32) {
    %c0_i32 = arith.constant 0 : i32
    %c0_i32_0 = arith.constant 0 : i32
    %c0_i32_1 = arith.constant 0 : i32
    return %arg0, %c0_i32, %c0_i32_0 : i32, i32, i32
  }
}

</mosaic_0001>

<bundles_post_ra>
// kernel: tpu_custom_call.1
= control target key start
LH: loop header
LB: loop body
LE: loop exit
PB: predicated region body
PF: predicated region fallthrough
CT: control target
= control target key end

     0   :  { %10 = vsyncpa [#allocation3], 0  ;;  %s361_s0 = inlined_call_operand.hbm [shape: f32[16,128], index: 0, kind: input, shape index: {}]   ;;  %s362_s1 = inlined_call_operand.hbm [shape: f32[16,128], index: 1, kind: input, shape index: {}]   ;;  %s363_s2 = inlined_call_operand.hbm [shape: u8[16,128], index: 2, kind: input, shape index: {}]   ;;  %s364_s3 = inlined_call_operand.hbm [shape: f32[1,8,128], index: 3, kind: output, shape index: {0}]   ;;  %s365_s4 = inlined_call_operand.hbm [shape: f32[1,8,128], index: 4, kind: output, shape index: {1}]  }
   0x1   :  { %11 = vsyncpa [#allocation6], 0 }
   0x2   :  { %12 = vsyncpa [#allocation4], 0 }
   0x3   :  { %13 = vsyncpa [#allocation10], 0  ;;  %s294_s15 = smov [#allocation5]   ;;  %s295_s17 = smov [#allocation2]  }
   0x4   :  { %s43_s16 = sshll.u32 %s294_s15, 4  ;;  %s25_s18 = sshll.u32 %s295_s17, 4  ;;  %s44_s16 = int_to_ptr.vmem [resolvable:$true] %s43_s16  ;;  %s26_s18 = int_to_ptr.vmem [resolvable:$true] %s25_s18 }
   0x5   :  { %s194_s19 = scalar_lea.vmem %s44_s16, 256  ;;  %p199_p1 = scmp.lt.s32.totalorder %s44_s16, %s44_s16 }
   0x6   :  { %p195_p0 = scmp.ne.s32.totalorder %s44_s16, %s194_s19  ;;  %p200_p2 = scmp.lt.s32.totalorder %s194_s19, %s194_s19 }
   0x8   :  { %p201_p3 = por %p200_p2, %p199_p1 }
   0xa   :  { %p202_p4 = pnand %p201_p3, %p195_p0 }
   0xc   :  { %205 = shalt.err (!%p202_p4)
}
   0xd   :  { %s296_s20 = smov 128   ;;  %s297_s21 = smov 8  }
   0xe   :  { %49 = dma.hbm_to_vmem [thread:$0]  %s362_s1, 256, %s44_s16, [#allocation6], %s296_s20, %s296_s20, %s297_s21  }
   0xf   :  { %s214_s24 = scalar_lea.vmem %s26_s18, 256  ;;  %p219_p6 = scmp.lt.s32.totalorder %s26_s18, %s26_s18 }
  0x10   :  { %p215_p5 = scmp.ne.s32.totalorder %s26_s18, %s214_s24  ;;  %p220_p7 = scmp.lt.s32.totalorder %s214_s24, %s214_s24 }
  0x12   :  { %p221_p8 = por %p220_p7, %p219_p6 }
  0x14   :  { %p222_p9 = pnand %p221_p8, %p215_p5 }
  0x16   :  { %225 = shalt.err (!%p222_p9)
}
  0x17   :  { %31 = dma.hbm_to_vmem [thread:$0]  %s361_s0, 256, %s26_s18, [#allocation3], %s296_s20, %s296_s20, %s297_s21  }
  0x18   :  { %s298_s27 = smov [#allocation7]  }
  0x19   :  { %s61_s28 = sshll.u32 %s298_s27, 4  ;;  %s62_s28 = int_to_ptr.vmem [resolvable:$true] %s61_s28 }
  0x1a   :  { %s234_s29 = scalar_lea.vmem %s62_s28, 64  ;;  %p239_p11 = scmp.lt.s32.totalorder %s62_s28, %s62_s28 }
  0x1b   :  { %p235_p10 = scmp.ne.s32.totalorder %s62_s28, %s234_s29  ;;  %p240_p12 = scmp.lt.s32.totalorder %s234_s29, %s234_s29 }
  0x1d   :  { %p241_p13 = por %p240_p12, %p239_p11 }
  0x1f   :  { %p242_p0 = pnand %p241_p13, %p235_p10 }
  0x21   :  { %245 = shalt.err (!%p242_p0)
}
  0x22   :  { %s299_s1 = smov 32   ;;  %s300_s30 = smov 2  }
  0x23   :  { %67 = dma.hbm_to_vmem [thread:$0]  %s363_s2, 64, %s62_s28, [#allocation6], %s299_s1, %s299_s1, %s300_s30  }
  0x24   :  { %286 = dma.done.wait [#allocation3], 256  }
  0x25   :  { %287 = vsyncadd [#allocation3], 4294967040 }
  0x26   :  { %288 = dma.done.wait [#allocation6], 320  }
  0x27   :  { %289 = vsyncadd [#allocation6], 4294966976  ;;  %v97_v0 = vld [vmem:[#allocation2] sm:$0xff]  ;;  %v98_v1 = vld [vmem:[#allocation2 + $0x8] sm:$0xff]  ;;  %v301_v9 = vmov 0   ;;  %v302_v20 = vmov 0.0  }
  0x28   :  { %v99_v2 = vld [vmem:[#allocation5] sm:$0xff]  ;;  %v100_v3 = vld [vmem:[#allocation5 + $0x8] sm:$0xff]  ;;  %v113_v5 = vld [vmem:[#allocation7] sm:$0x3]  ;;  %s303_s0 = smov [#allocation9]  }
  0x29   :  { %v101_v4 = vsub.f32 %v97_v0, %v99_v2  ;;  %v114_v6 = vld [vmem:[#allocation7 + $0x2] sm:$0x3]  ;;  %v102_v7 = vsub.f32 %v98_v1, %v100_v3  ;;  %vm115_vm0 = vnez %v113_v5  ;;  %s153_s2 = sshll.u32 %s303_s0, 4  ;;  %s154_s2 = int_to_ptr.vmem [resolvable:$true] %s153_s2 }
  0x2a   :  { %vm116_vm1 = vnez %v114_v6  ;;  %v118_v10 = vsel %vm115_vm0, 16843009, %v301_v9  ;;  %s246_s7 = scalar_lea.vmem %s154_s2, 128  ;;  %p251_p2 = scmp.lt.s32.totalorder %s154_s2, %s154_s2 }
  0x2b   :  { %v103_v8 = vand.u32 2147483647, %v101_v4  ;;  %v119_v11 = vsel %vm116_vm1, 16843009, %v301_v9  ;;  %v104_v12 = vand.u32 2147483647, %v102_v7  ;;  %v120_v13 = vunpack.c.0.s8 %v118_v10  ;;  %p247_p1 = scmp.ne.s32.totalorder %s154_s2, %s246_s7  ;;  %p252_p3 = scmp.lt.s32.totalorder %s246_s7, %s246_s7 }
  0x2c   :  { %v121_v14 = vunpack.c.0.s8 %v119_v11 }
  0x2d   :  { %v105_v15 = vmin.f32 %v103_v8, 1.0  ;;  %v106_v16 = vmin.f32 %v104_v12, 1.0  ;;  %vm339_vm2 = vcmp.ne.s32.totalorder %v120_v13, 0  ;;  %p253_p4 = por %p252_p3, %p251_p2 }
  0x2e   :  { %vm343_vm3 = vcmp.ne.s32.totalorder %v121_v14, 0  ;;  %v173_v21 = vsel %vm339_vm2, 1.0, %v302_v20 }
  0x2f   :  { %v107_v19 = vmul.f32 0.5, %v105_v15  ;;  %v174_v22 = vsel %vm343_vm3, 1.0, %v302_v20  ;;  %v108_v23 = vmul.f32 0.5, %v106_v16  ;;  %p254_p5 = pnand %p253_p4, %p247_p1 }
  0x30   :  { %v134_v24 = vadd.f32 %v174_v22, %v173_v21 }
  0x31   :  { %v109_v25 = vsub.f32 %v103_v8, %v107_v19  ;;  %v110_v26 = vsub.f32 %v104_v12, %v108_v23 }
  0x32   :  { %136 = vst [vmem:[#allocation9] sm:$0xff] %v134_v24 }
  0x33   :  { %v111_v27 = vmul.f32 %v109_v25, %v105_v15  ;;  %v112_v28 = vmul.f32 %v110_v26, %v106_v16 }
  0x35   :  { %v124_v29 = vsel %vm339_vm2, %v111_v27, 0.0 }
  0x36   :  { %257 = shalt.err (!%p254_p5)
}
  0x37   :  { %156 = dma.vmem_to_hbm [thread:$0]  %s154_s2, 128, %s365_s4, [#allocation10]   ;;  %v125_v30 = vsel %vm343_vm3, %v112_v28, 0.0 }
  0x38   :  { %s304_s10 = smov [#allocation8]   ;;  %v126_v31 = vadd.f32 %v125_v30, %v124_v29 }
  0x39   :  { %s143_s11 = sshll.u32 %s304_s10, 4  ;;  %s144_s11 = int_to_ptr.vmem [resolvable:$true] %s143_s11 }
  0x3a   :  { %128 = vst [vmem:[#allocation8] sm:$0xff] %v126_v31  ;;  %s266_s12 = scalar_lea.vmem %s144_s11, 128  ;;  %p271_p7 = scmp.lt.s32.totalorder %s144_s11, %s144_s11 }
  0x3b   :  { %p267_p6 = scmp.ne.s32.totalorder %s144_s11, %s266_s12  ;;  %p272_p8 = scmp.lt.s32.totalorder %s266_s12, %s266_s12 }
  0x3d   :  { %p273_p9 = por %p272_p8, %p271_p7 }
  0x3f   :  { %p274_p10 = pnand %p273_p9, %p267_p6 }
  0x41   :  { %277 = shalt.err (!%p274_p10)
}
  0x42   :  { %146 = dma.vmem_to_hbm [thread:$0]  %s144_s11, 128, %s364_s3, [#allocation4]  }
  0x43   :  { %290 = dma.done.wait [#allocation4], 128  }
  0x44   :  { %291 = vsyncadd [#allocation4], 4294967168 }
  0x45   :  { %292 = dma.done.wait [#allocation10], 128  }
  0x46   :  { %293 = vsyncadd [#allocation10], 4294967168 }
  0x47   :  { %163 = vsyncpa [#allocation3], 1 }
  0x48   :  { %164 = vsyncpa [#allocation6], 1 }
  0x49   :  { %165 = vsyncpa [#allocation4], 1 }
  0x4a   :  { %166 = vsyncpa [#allocation10], 1 }

</bundles_post_ra>
